<compile_context>
chip_gen: v7x
topology: tpu7x:2x2x1
jax: 0.10.0
libtpu: 0.0.40
codegen_flags: <defaults>
</compile_context>

<pallas_src>
import jax
import jax.numpy as jnp
from jax.experimental import pallas as pl
from jax.experimental.pallas import tpu as pltpu

# logical / padded sizes
IN_F = 104                      # input features: read as-is, no lane padding
H0_F, H0_PAD = 250, 256         # first hidden dim padded to lane multiple
H1_F, H1_PAD = 100, 128         # second hidden dim padded to lane multiple
OUT_F, OUT_PACK = 4, 8          # two 4-wide heads packed into 8 lanes

DEFAULT_BLOCK_B = 2048          # batch tile (cap); fits v5e/v6e/v7x VMEM easily
VMEM_LIMIT_BYTES = 48 * 1024 * 1024


def _round_up(x, m):
    return ((x + m - 1) // m) * m


def _two_head_kernel(x_ref,
                     w_in_ref, b_in_ref,
                     w_h1_ref, b_h1_ref, w_o1_ref,
                     w_h2_ref, b_h2_ref, w_o2_ref,
                     b_out_ref,
                     out_ref):
    cdt = w_in_ref.dtype
    # raw (TB, 104) f32 tile; cast to the MXU compute dtype in VMEM
    x = x_ref[...].astype(cdt)

    # shared first layer: Linear(104 -> 250), output lanes padded to 256
    h0 = jnp.dot(x, w_in_ref[...],
                 preferred_element_type=jnp.float32) + b_in_ref[...]      # (TB,256) f32

    # ---- head 1 (value, leaky_relu path) finished first: short live ranges ----
    a1 = jnp.maximum(h0, 0.01 * h0).astype(cdt)
    h1 = jnp.dot(a1, w_h1_ref[...],
                 preferred_element_type=jnp.float32) + b_h1_ref[...]      # (TB,128) f32
    a2 = jnp.maximum(h1, 0.01 * h1).astype(cdt)
    acc = jnp.dot(a2, w_o1_ref[...], preferred_element_type=jnp.float32)  # (TB,8)

    # ---- head 2 (classification, relu path) ----
    r1 = jnp.maximum(h0, 0.0).astype(cdt)
    h2 = jnp.dot(r1, w_h2_ref[...],
                 preferred_element_type=jnp.float32) + b_h2_ref[...]      # (TB,128) f32
    r2 = jnp.maximum(h2, 0.0).astype(cdt)
    acc = acc + jnp.dot(r2, w_o2_ref[...], preferred_element_type=jnp.float32)

    # single lane-dense store: head1 -> lanes 0:4, head2 -> lanes 4:8
    out_ref[...] = (acc + b_out_ref[...]).astype(out_ref.dtype)


def _pad2(a, rows, cols):
    r, c = a.shape
    return jnp.pad(a, ((0, rows - r), (0, cols - c)))


def prepare_padded_params(params, use_bf16=True):
    """Pad/pack the weights ONCE (hoisted out of the forward path).

    Weight matrices go to the MXU compute dtype (bf16 by default); biases stay
    f32 (added after the f32 accumulation).  Padded rows/cols are zero, so the
    padded lanes stay exactly zero through both heads.
    """
    f32 = jnp.float32
    cdt = jnp.bfloat16 if use_bf16 else jnp.float32

    w_in = _pad2(params["w_in"].astype(f32), IN_F, H0_PAD)               # (104,256)
    b_in = _pad2(params["b_in"].astype(f32), 1, H0_PAD)                  # (1,256)
    w_h1 = _pad2(params["w_h1"].astype(f32), H0_PAD, H1_PAD)             # (256,128)
    b_h1 = _pad2(params["b_h1"].astype(f32), 1, H1_PAD)                  # (1,128)
    w_h2 = _pad2(params["w_h2"].astype(f32), H0_PAD, H1_PAD)             # (256,128)
    b_h2 = _pad2(params["b_h2"].astype(f32), 1, H1_PAD)                  # (1,128)

    # output weights packed: head1 -> lanes 0:4, head2 -> lanes 4:8
    w_o1 = jnp.zeros((H1_PAD, OUT_PACK), f32).at[:H1_F, :OUT_F].set(
        params["w_o1"].astype(f32))                                      # (128,8)
    w_o2 = jnp.zeros((H1_PAD, OUT_PACK), f32).at[:H1_F, OUT_F:].set(
        params["w_o2"].astype(f32))                                      # (128,8)
    b_out = jnp.concatenate(
        [params["b_o1"].astype(f32), params["b_o2"].astype(f32)], axis=1)  # (1,8)

    return {
        "w_in": w_in.astype(cdt), "b_in": b_in,
        "w_h1": w_h1.astype(cdt), "b_h1": b_h1,
        "w_h2": w_h2.astype(cdt), "b_h2": b_h2,
        "w_o1": w_o1.astype(cdt), "w_o2": w_o2.astype(cdt),
        "b_out": b_out,
    }


def model_player_value_head_forward(inp, padded_params, *,
                                    block_b=DEFAULT_BLOCK_B):
    """inp: (B, 104) float32; padded_params: output of prepare_padded_params.

    Returns (out1, out2), each (B, 4) float32.
    """
    B, F = inp.shape
    assert F == IN_F, f"expected {IN_F} input features, got {F}"
    pp = padded_params

    # Batch tile: multiple of 8 sublanes, capped by block_b, and chosen so that
    # batches split into >=2 grid steps where possible (both TCs on v7x).
    TB = max(8, min(block_b, _round_up(pl.cdiv(B, 2), 8)))
    num_blocks = pl.cdiv(B, TB)           # no batch padding; last block is partial

    def resident(arr):
        # whole-array block, constant index -> stays VMEM-resident across steps
        return pl.BlockSpec(arr.shape, lambda i: (0, 0))

    # advisory cost estimate for XLA scheduling around the custom call
    mxu_terms = IN_F * H0_PAD + 2 * H0_PAD * H1_PAD + 2 * H1_PAD * OUT_PACK
    wbytes = jnp.dtype(pp["w_in"].dtype).itemsize
    weight_bytes = (mxu_terms * wbytes
                    + (H0_PAD + 2 * H1_PAD + OUT_PACK) * 4)
    cost = pl.CostEstimate(
        flops=2 * B * mxu_terms,
        transcendentals=0,
        bytes_accessed=B * (IN_F * 4 + OUT_PACK * 4) + weight_bytes)

    out = pl.pallas_call(
        _two_head_kernel,
        out_shape=jax.ShapeDtypeStruct((B, OUT_PACK), jnp.float32),
        grid=(num_blocks,),
        in_specs=[
            pl.BlockSpec((TB, IN_F), lambda i: (i, 0)),   # x: batch-tiled, raw 104 lanes
            resident(pp["w_in"]), resident(pp["b_in"]),
            resident(pp["w_h1"]), resident(pp["b_h1"]), resident(pp["w_o1"]),
            resident(pp["w_h2"]), resident(pp["b_h2"]), resident(pp["w_o2"]),
            resident(pp["b_out"]),
        ],
        out_specs=pl.BlockSpec((TB, OUT_PACK), lambda i: (i, 0)),
        compiler_params=pltpu.CompilerParams(
            dimension_semantics=("parallel",),            # shards across TCs on v7x
            vmem_limit_bytes=VMEM_LIMIT_BYTES),
        cost_estimate=cost,
    )(inp,
      pp["w_in"], pp["b_in"],
      pp["w_h1"], pp["b_h1"], pp["w_o1"],
      pp["w_h2"], pp["b_h2"], pp["w_o2"],
      pp["b_out"])

    out1 = out[:, :OUT_F]
    out2 = out[:, OUT_F:OUT_PACK]
    return out1, out2


def init_params(key):
    """Deterministic synthetic parameters (PyTorch-Linear shapes, transposed)."""
    dims = {
        "in": (104, 250),
        "h1": (250, 100),
        "h2": (250, 100),
        "o1": (100, 4),
        "o2": (100, 4),
    }
    params = {}
    keys = jax.random.split(key, 2 * len(dims))
    for i, (name, (fan_in, fan_out)) in enumerate(dims.items()):
        bound = 1.0 / jnp.sqrt(fan_in)
        w = jax.random.uniform(keys[2 * i], (fan_in, fan_out),
                               minval=-bound, maxval=bound, dtype=jnp.float32)
        b = jax.random.uniform(keys[2 * i + 1], (1, fan_out),
                               minval=-bound, maxval=bound, dtype=jnp.float32)
        params[f"w_{name}"] = w
        params[f"b_{name}"] = b
    return params


def _reference_forward(inp, p):
    def leaky(h):
        return jnp.where(h > 0, h, 0.01 * h)
    h0 = inp @ p["w_in"] + p["b_in"]
    x = leaky(h0) @ p["w_h1"] + p["b_h1"]
    x = leaky(x) @ p["w_o1"] + p["b_o1"]
    y = jnp.maximum(h0, 0.0) @ p["w_h2"] + p["b_h2"]
    y = jnp.maximum(y, 0.0) @ p["w_o2"] + p["b_o2"]
    return x, y


if __name__ == "__main__":
    key = jax.random.PRNGKey(0)
    k_inp, k_par, k_inp2 = jax.random.split(key, 3)
    params = init_params(k_par)

    # Hoisted: pad/pack the weights once, reuse for every forward call.
    padded = prepare_padded_params(params, use_bf16=True)

    # bf16 MXU path with f32 accumulation -> relaxed (but still tight) tolerances
    TOL = 3e-2

    # --- test 1: small batch, single grid step ---
    B = 8
    inp = jax.random.normal(k_inp, (B, 104), dtype=jnp.float32)
    out1, out2 = model_player_value_head_forward(inp, padded)
    jax.block_until_ready((out1, out2))
    ref1, ref2 = _reference_forward(inp, params)
    assert out1.shape == (B, 4) and out2.shape == (B, 4)
    assert jnp.allclose(out1, ref1, atol=TOL, rtol=TOL)
    assert jnp.allclose(out2, ref2, atol=TOL, rtol=TOL)

    # --- test 2: non-multiple batch + multi-step grid with a partial last block ---
    B2 = 20
    inp2 = jax.random.normal(k_inp2, (B2, 104), dtype=jnp.float32)
    out1b, out2b = model_player_value_head_forward(inp2, padded, block_b=8)
    jax.block_until_ready((out1b, out2b))
    ref1b, ref2b = _reference_forward(inp2, params)
    assert out1b.shape == (B2, 4) and out2b.shape == (B2, 4)
    assert jnp.allclose(out1b, ref1b, atol=TOL, rtol=TOL)
    assert jnp.allclose(out2b, ref2b, atol=TOL, rtol=TOL)

    print("KERNEL_OK")
</pallas_src>

<mosaic_0001>
module attributes {stable_mosaic.version = 11 : i64} {
  func.func @_two_head_kernel(%arg0: i32, %arg1: memref<8x104xf32, #tpu.memory_space<vmem>>, %arg2: memref<104x256xbf16, #tpu.memory_space<vmem>>, %arg3: memref<1x256xf32, #tpu.memory_space<vmem>>, %arg4: memref<256x128xbf16, #tpu.memory_space<vmem>>, %arg5: memref<1x128xf32, #tpu.memory_space<vmem>>, %arg6: memref<128x8xbf16, #tpu.memory_space<vmem>>, %arg7: memref<256x128xbf16, #tpu.memory_space<vmem>>, %arg8: memref<1x128xf32, #tpu.memory_space<vmem>>, %arg9: memref<128x8xbf16, #tpu.memory_space<vmem>>, %arg10: memref<1x8xf32, #tpu.memory_space<vmem>>, %arg11: memref<8x8xf32, #tpu.memory_space<vmem>>) attributes {dimension_semantics = [#tpu.dimension_semantics<parallel>], iteration_bounds = array<i64: 1>, scalar_prefetch = 0 : i64, scratch_operands = 0 : i64, tpu.core_type = #tpu.core_type<tc>, window_params = [{transform_indices = @transform_0, window_bounds = array<i64: 8, 104>}, {pipeline_mode = #tpu.pipeline_mode<synchronous>, transform_indices = @transform_1, window_bounds = array<i64: 104, 256>}, {pipeline_mode = #tpu.pipeline_mode<synchronous>, transform_indices = @transform_2, window_bounds = array<i64: 1, 256>}, {pipeline_mode = #tpu.pipeline_mode<synchronous>, transform_indices = @transform_3, window_bounds = array<i64: 256, 128>}, {pipeline_mode = #tpu.pipeline_mode<synchronous>, transform_indices = @transform_4, window_bounds = array<i64: 1, 128>}, {pipeline_mode = #tpu.pipeline_mode<synchronous>, transform_indices = @transform_5, window_bounds = array<i64: 128, 8>}, {pipeline_mode = #tpu.pipeline_mode<synchronous>, transform_indices = @transform_6, window_bounds = array<i64: 256, 128>}, {pipeline_mode = #tpu.pipeline_mode<synchronous>, transform_indices = @transform_7, window_bounds = array<i64: 1, 128>}, {pipeline_mode = #tpu.pipeline_mode<synchronous>, transform_indices = @transform_8, window_bounds = array<i64: 128, 8>}, {pipeline_mode = #tpu.pipeline_mode<synchronous>, transform_indices = @transform_9, window_bounds = array<i64: 1, 8>}, {transform_indices = @transform_10, window_bounds = array<i64: 8, 8>}]} {
    %c0 = arith.constant 0 : index
    %c0_0 = arith.constant 0 : index
    %0 = vector.load %arg1[%c0, %c0_0] : memref<8x104xf32, #tpu.memory_space<vmem>>, vector<8x104xf32>
    %1 = arith.truncf %0 : vector<8x104xf32> to vector<8x104xbf16>
    %c0_1 = arith.constant 0 : index
    %c0_2 = arith.constant 0 : index
    %2 = vector.load %arg2[%c0_1, %c0_2] : memref<104x256xbf16, #tpu.memory_space<vmem>>, vector<104x256xbf16>
    %cst = arith.constant dense<0.000000e+00> : vector<8x256xf32>
    %3 = tpu.matmul %1, %2, %cst {dimension_numbers = #tpu.dot_dimension_numbers<[1], [0], [0], [1], [0, 0, 1, 1], [], []>} : vector<8x104xbf16>, vector<104x256xbf16>, vector<8x256xf32> -> vector<8x256xf32>
    %c0_3 = arith.constant 0 : index
    %c0_4 = arith.constant 0 : index
    %4 = vector.load %arg3[%c0_3, %c0_4] : memref<1x256xf32, #tpu.memory_space<vmem>>, vector<1x256xf32>
    %5 = vector.broadcast %4 : vector<1x256xf32> to vector<8x256xf32>
    %6 = arith.addf %3, %5 : vector<8x256xf32>
    %cst_5 = arith.constant 0.00999999977 : f32
    %7 = vector.broadcast %cst_5 : f32 to vector<8x256xf32>
    %8 = arith.mulf %7, %6 : vector<8x256xf32>
    %9 = arith.maximumf %6, %8 : vector<8x256xf32>
    %10 = arith.truncf %9 : vector<8x256xf32> to vector<8x256xbf16>
    %c0_6 = arith.constant 0 : index
    %c0_7 = arith.constant 0 : index
    %11 = vector.load %arg4[%c0_6, %c0_7] : memref<256x128xbf16, #tpu.memory_space<vmem>>, vector<256x128xbf16>
    %cst_8 = arith.constant dense<0.000000e+00> : vector<8x128xf32>
    %12 = tpu.matmul %10, %11, %cst_8 {dimension_numbers = #tpu.dot_dimension_numbers<[1], [0], [0], [1], [0, 0, 1, 1], [], []>} : vector<8x256xbf16>, vector<256x128xbf16>, vector<8x128xf32> -> vector<8x128xf32>
    %c0_9 = arith.constant 0 : index
    %c0_10 = arith.constant 0 : index
    %13 = vector.load %arg5[%c0_9, %c0_10] : memref<1x128xf32, #tpu.memory_space<vmem>>, vector<1x128xf32>
    %14 = vector.broadcast %13 : vector<1x128xf32> to vector<8x128xf32>
    %15 = arith.addf %12, %14 : vector<8x128xf32>
    %cst_11 = arith.constant 0.00999999977 : f32
    %16 = vector.broadcast %cst_11 : f32 to vector<8x128xf32>
    %17 = arith.mulf %16, %15 : vector<8x128xf32>
    %18 = arith.maximumf %15, %17 : vector<8x128xf32>
    %19 = arith.truncf %18 : vector<8x128xf32> to vector<8x128xbf16>
    %c0_12 = arith.constant 0 : index
    %c0_13 = arith.constant 0 : index
    %20 = vector.load %arg6[%c0_12, %c0_13] : memref<128x8xbf16, #tpu.memory_space<vmem>>, vector<128x8xbf16>
    %cst_14 = arith.constant dense<0.000000e+00> : vector<8x8xf32>
    %21 = tpu.matmul %19, %20, %cst_14 {dimension_numbers = #tpu.dot_dimension_numbers<[1], [0], [0], [1], [0, 0, 1, 1], [], []>} : vector<8x128xbf16>, vector<128x8xbf16>, vector<8x8xf32> -> vector<8x8xf32>
    %cst_15 = arith.constant 0.000000e+00 : f32
    %22 = vector.broadcast %cst_15 : f32 to vector<8x256xf32>
    %23 = arith.maximumf %6, %22 : vector<8x256xf32>
    %24 = arith.truncf %23 : vector<8x256xf32> to vector<8x256xbf16>
    %c0_16 = arith.constant 0 : index
    %c0_17 = arith.constant 0 : index
    %25 = vector.load %arg7[%c0_16, %c0_17] : memref<256x128xbf16, #tpu.memory_space<vmem>>, vector<256x128xbf16>
    %cst_18 = arith.constant dense<0.000000e+00> : vector<8x128xf32>
    %26 = tpu.matmul %24, %25, %cst_18 {dimension_numbers = #tpu.dot_dimension_numbers<[1], [0], [0], [1], [0, 0, 1, 1], [], []>} : vector<8x256xbf16>, vector<256x128xbf16>, vector<8x128xf32> -> vector<8x128xf32>
    %c0_19 = arith.constant 0 : index
    %c0_20 = arith.constant 0 : index
    %27 = vector.load %arg8[%c0_19, %c0_20] : memref<1x128xf32, #tpu.memory_space<vmem>>, vector<1x128xf32>
    %28 = vector.broadcast %27 : vector<1x128xf32> to vector<8x128xf32>
    %29 = arith.addf %26, %28 : vector<8x128xf32>
    %cst_21 = arith.constant 0.000000e+00 : f32
    %30 = vector.broadcast %cst_21 : f32 to vector<8x128xf32>
    %31 = arith.maximumf %29, %30 : vector<8x128xf32>
    %32 = arith.truncf %31 : vector<8x128xf32> to vector<8x128xbf16>
    %c0_22 = arith.constant 0 : index
    %c0_23 = arith.constant 0 : index
    %33 = vector.load %arg9[%c0_22, %c0_23] : memref<128x8xbf16, #tpu.memory_space<vmem>>, vector<128x8xbf16>
    %cst_24 = arith.constant dense<0.000000e+00> : vector<8x8xf32>
    %34 = tpu.matmul %32, %33, %cst_24 {dimension_numbers = #tpu.dot_dimension_numbers<[1], [0], [0], [1], [0, 0, 1, 1], [], []>} : vector<8x128xbf16>, vector<128x8xbf16>, vector<8x8xf32> -> vector<8x8xf32>
    %35 = arith.addf %21, %34 : vector<8x8xf32>
    %c0_25 = arith.constant 0 : index
    %c0_26 = arith.constant 0 : index
    %36 = vector.load %arg10[%c0_25, %c0_26] : memref<1x8xf32, #tpu.memory_space<vmem>>, vector<1x8xf32>
    %37 = vector.broadcast %36 : vector<1x8xf32> to vector<8x8xf32>
    %38 = arith.addf %35, %37 : vector<8x8xf32>
    %c0_27 = arith.constant 0 : index
    %c0_28 = arith.constant 0 : index
    %39 = vector.load %arg11[%c0_27, %c0_28] : memref<8x8xf32, #tpu.memory_space<vmem>>, vector<8x8xf32>
    tpu.vector_store %arg11[%c0_27, %c0_28], %38 {strides = array<i32>} : memref<8x8xf32, #tpu.memory_space<vmem>>, vector<8x8xf32>,
    return
  }
  func.func @transform_0(%arg0: i32) -> (i32, i32) {
    %c0_i32 = arith.constant 0 : i32
    %c0_i32_0 = arith.constant 0 : i32
    return %arg0, %c0_i32 : i32, i32
  }
  func.func @transform_1(%arg0: i32) -> (i32, i32) {
    %c0_i32 = arith.constant 0 : i32
    %c0_i32_0 = arith.constant 0 : i32
    %c0_i32_1 = arith.constant 0 : i32
    return %c0_i32, %c0_i32_0 : i32, i32
  }
  func.func @transform_2(%arg0: i32) -> (i32, i32) {
    %c0_i32 = arith.constant 0 : i32
    %c0_i32_0 = arith.constant 0 : i32
    %c0_i32_1 = arith.constant 0 : i32
    return %c0_i32, %c0_i32_0 : i32, i32
  }
  func.func @transform_3(%arg0: i32) -> (i32, i32) {
    %c0_i32 = arith.constant 0 : i32
    %c0_i32_0 = arith.constant 0 : i32
    %c0_i32_1 = arith.constant 0 : i32
    return %c0_i32, %c0_i32_0 : i32, i32
  }
  func.func @transform_4(%arg0: i32) -> (i32, i32) {
    %c0_i32 = arith.constant 0 : i32
    %c0_i32_0 = arith.constant 0 : i32
    %c0_i32_1 = arith.constant 0 : i32
    return %c0_i32, %c0_i32_0 : i32, i32
  }
  func.func @transform_5(%arg0: i32) -> (i32, i32) {
    %c0_i32 = arith.constant 0 : i32
    %c0_i32_0 = arith.constant 0 : i32
    %c0_i32_1 = arith.constant 0 : i32
    return %c0_i32, %c0_i32_0 : i32, i32
  }
  func.func @transform_6(%arg0: i32) -> (i32, i32) {
    %c0_i32 = arith.constant 0 : i32
    %c0_i32_0 = arith.constant 0 : i32
    %c0_i32_1 = arith.constant 0 : i32
    return %c0_i32, %c0_i32_0 : i32, i32
  }
  func.func @transform_7(%arg0: i32) -> (i32, i32) {
    %c0_i32 = arith.constant 0 : i32
    %c0_i32_0 = arith.constant 0 : i32
    %c0_i32_1 = arith.constant 0 : i32
    return %c0_i32, %c0_i32_0 : i32, i32
  }
  func.func @transform_8(%arg0: i32) -> (i32, i32) {
    %c0_i32 = arith.constant 0 : i32
    %c0_i32_0 = arith.constant 0 : i32
    %c0_i32_1 = arith.constant 0 : i32
    return %c0_i32, %c0_i32_0 : i32, i32
  }
  func.func @transform_9(%arg0: i32) -> (i32, i32) {
    %c0_i32 = arith.constant 0 : i32
    %c0_i32_0 = arith.constant 0 : i32
    %c0_i32_1 = arith.constant 0 : i32
    return %c0_i32, %c0_i32_0 : i32, i32
  }
  func.func @transform_10(%arg0: i32) -> (i32, i32) {
    %c0_i32 = arith.constant 0 : i32
    %c0_i32_0 = arith.constant 0 : i32
    return %arg0, %c0_i32 : i32, i32
  }
}

</mosaic_0001>

<bundles_post_ra>
// kernel: tpu_custom_call.1
= control target key start
LH: loop header
LB: loop body
LE: loop exit
PB: predicated region body
PF: predicated region fallthrough
CT: control target
= control target key end

     0   :  { %15 = vsyncpa [#allocation3], 0  ;;  %s1357_s0 = inlined_call_operand.vmem [shape: f32[8,104], index: 0, kind: input, shape index: {}]   ;;  %s1358_s1 = inlined_call_operand.hbm [shape: bf16[104,256], index: 1, kind: input, shape index: {}]   ;;  %s1359_s2 = inlined_call_operand.vmem [shape: f32[1,256], index: 2, kind: input, shape index: {}]   ;;  %s1360_s3 = inlined_call_operand.vmem [shape: bf16[256,128], index: 3, kind: input, shape index: {}]   ;;  %s1361_s4 = inlined_call_operand.vmem [shape: f32[1,128], index: 4, kind: input, shape index: {}]   ;;  %s1362_s5 = inlined_call_operand.vmem [shape: bf16[128,8], index: 5, kind: input, shape index: {}]   ;;  %s1363_s6 = inlined_call_operand.hbm [shape: bf16[256,128], index: 6, kind: input, shape index: {}]   ;;  %s1364_s7 = inlined_call_operand.vmem [shape: f32[1,128], index: 7, kind: input, shape index: {}]   ;;  %s1365_s8 = inlined_call_operand.vmem [shape: bf16[128,8], index: 8, kind: input, shape index: {}]   ;;  %s1366_s9 = inlined_call_operand.vmem [shape: f32[1,8], index: 9, kind: input, shape index: {}]   ;;  %s1367_s10 = inlined_call_operand.hbm [shape: f32[8,8], index: 10, kind: output, shape index: {}]  }
   0x1   :  { %16 = vsyncpa [#allocation6], 0 }
   0x2   :  { %17 = vsyncpa [#allocation4], 0  ;;  %s1127_s13 = smov [#allocation2]   ;;  %s1055_s17 = scalar_lea.hbm %s1358_s1, 1664 }
   0x3   :  { %s25_s14 = sshll.u32 %s1127_s13, 4  ;;  %p1056_p0 = scmp.ne.s32.totalorder %s1358_s1, %s1055_s17  ;;  %s26_s14 = int_to_ptr.vmem [resolvable:$true] %s25_s14 }
   0x4   :  { %p1059_p1 = scmp.lt.u32.totalorder %s1055_s17, %s1358_s1 }
   0x6   :  { %p1061_p2 = pnand %p1059_p1, %p1056_p0 }
   0x8   :  { %1064 = shalt.err (!%p1061_p2)
}
   0x9   :  { %s1065_s22 = scalar_lea.vmem %s26_s14, 1664  ;;  %p1070_p4 = scmp.lt.s32.totalorder %s26_s14, %s26_s14 }
   0xa   :  { %p1066_p3 = scmp.ne.s32.totalorder %s26_s14, %s1065_s22  ;;  %p1071_p5 = scmp.lt.s32.totalorder %s1065_s22, %s1065_s22 }
   0xc   :  { %p1072_p6 = por %p1071_p5, %p1070_p4 }
   0xe   :  { %p1073_p7 = pnand %p1072_p6, %p1066_p3 }
  0x10   :  { %1076 = shalt.err (!%p1073_p7)
}
  0x11   :  { %s1128_s23 = smov 128   ;;  %s1129_s24 = smov 8  }
  0x12   :  { %31 = dma.hbm_to_vmem [thread:$0]  %s1358_s1, 1664, %s26_s14, [#allocation3], %s1128_s23, %s1128_s23, %s1129_s24  }
  0x13   :  { %s1130_s27 = smov [#allocation5]   ;;  %s1077_s11 = scalar_lea.hbm %s1363_s6, 2048 }
  0x14   :  { %s45_s28 = sshll.u32 %s1130_s27, 4  ;;  %p1078_p8 = scmp.ne.s32.totalorder %s1363_s6, %s1077_s11  ;;  %s46_s28 = int_to_ptr.vmem [resolvable:$true] %s45_s28 }
  0x15   :  { %p1081_p9 = scmp.lt.u32.totalorder %s1077_s11, %s1363_s6 }
  0x17   :  { %p1083_p10 = pnand %p1081_p9, %p1078_p8 }
  0x19   :  { %1086 = shalt.err (!%p1083_p10)
}
  0x1a   :  { %s1087_s17 = scalar_lea.vmem %s46_s28, 2048  ;;  %p1092_p12 = scmp.lt.s32.totalorder %s46_s28, %s46_s28 }
  0x1b   :  { %p1088_p11 = scmp.ne.s32.totalorder %s46_s28, %s1087_s17  ;;  %p1093_p13 = scmp.lt.s32.totalorder %s1087_s17, %s1087_s17 }
  0x1d   :  { %p1094_p0 = por %p1093_p13, %p1092_p12 }
  0x1f   :  { %p1095_p1 = pnand %p1094_p0, %p1088_p11 }
  0x21   :  { %1098 = shalt.err (!%p1095_p1)
}
  0x22   :  { %s1131_s1 = smov 64   ;;  %s1132_s14 = smov 4  }
  0x23   :  { %51 = dma.hbm_to_vmem [thread:$0]  %s1363_s6, 2048, %s46_s28, [#allocation6], %s1131_s1, %s1131_s1, %s1132_s14  }
  0x24   :  { %1121 = dma.done.wait [#allocation3], 1664  }
  0x25   :  { %1122 = vsyncadd [#allocation3], 4294965632 }
  0x26   :  { %1123 = dma.done.wait [#allocation6], 2048  }
  0x27   :  { %1124 = vsyncadd [#allocation6], 4294965248  ;;  %v1133_v0 = vmov 0   ;;  %v987_v1 = vld [vmem:[#allocation2 + $0x4] ss:$8 sps:$4 sm:$0xff]   ;;  %v1017_v18 = vld [vmem:[%s1360_s3 + $0x50] sm:$0xff]   ;;  %v82_v52 = vlaneseq }
  0x28   :  { %200 = vmatprep.mubr.bf16.mxu0 %v1133_v0  ;;  %v989_v2 = vld [vmem:[#allocation2] ss:$8 sps:$4 sm:$0xff]   ;;  %168 = vmatprep.subr.bf16.mxu0 %v987_v1  ;;  %v990_v3 = vld [vmem:[#allocation2 + $0x14] ss:$8 sps:$4 sm:$0xff]   ;;  %v992_v4 = vld [vmem:[#allocation2 + $0x10] ss:$8 sps:$4 sm:$0xff]  }
  0x29   :  { %169 = vmatpush1.bf16.msra.mxu0 %v989_v2  ;;  %v993_v5 = vld [vmem:[#allocation2 + $0x24] ss:$8 sps:$4 sm:$0xff]   ;;  %v995_v6 = vld [vmem:[#allocation2 + $0x20] ss:$8 sps:$4 sm:$0xff]   ;;  %v996_v7 = vld [vmem:[#allocation2 + $0x34] ss:$8 sps:$4 sm:$0xff]  }
  0x2a   :  { %170 = vmatprep.subr.bf16.mxu0 %v990_v3  ;;  %v998_v8 = vld [vmem:[#allocation2 + $0x30] ss:$8 sps:$4 sm:$0xff]   ;;  %v999_v9 = vld [vmem:[#allocation2 + $0x44] ss:$8 sps:$4 sm:$0xff]   ;;  %v1001_v12 = vld [vmem:[#allocation2 + $0x40] ss:$8 sps:$4 sm:$0xff]  }
  0x2b   :  { %v1009_v10 = vld [vmem:[%s1360_s3 + $0x40] sm:$0xff]   ;;  %v1002_v13 = vld [vmem:[#allocation2 + $0x54] ss:$8 sps:$4 sm:$0xff]   ;;  %v1013_v14 = vld [vmem:[%s1360_s3 + $0x48] sm:$0xff]   ;;  %vm161_vm0 = vcmask 1043456   ;;  %vm157_vm1 = vcmask 850944  }
  0x2c   :  { %v1010_v11 = vld [vmem:[%s1360_s3] sm:$0xff]   ;;  %875 = vmatprep.subr.bf16.mxu1 %v1009_v10  ;;  %v1014_v15 = vld [vmem:[%s1360_s3 + $0x8] sm:$0xff]   ;;  %v1004_v17 = vld [vmem:[#allocation2 + $0x50] ss:$8 sps:$4 sm:$0xff]   ;;  %v1134_v51 = vmov 0.0   ;;  %v83_v53 = vshrl.u32 %v82_v52, 7 }
  0x2d   :  { %171 = vmatpush1.bf16.msra.mxu0 %v992_v4  ;;  %876 = vmatpush3.bf16.msra.mxu1 %v1010_v11  ;;  %v79_v16 = vld [vmem:[#allocation2 + $0x60] sm:$0xff]  ;;  %v1018_v21 = vld [vmem:[%s1360_s3 + $0x10] sm:$0xff]   ;;  %v1007_v23 = vld [vmem:[#allocation5 + $0x40] sm:$0xff]   ;;  %vm1135_vm2 = vmmov 0   ;;  %vm790_vm3 = vcmask 64512  }
  0x2e   :  { %172 = vmatprep.subr.bf16.mxu0 %v993_v5  ;;  %877 = vmatprep.subr.bf16.mxu1 %v1013_v14  ;;  %v821_v19 = vcombine.high %v79_v16, %v79_v16  ;;  %v820_v20 = vcombine.low %v79_v16, %v79_v16  ;;  %v65_v22 = vld [vmem:[%s1357_s0] sm:$0xff]  ;;  %v1021_v24 = vld [vmem:[%s1360_s3 + $0x58] sm:$0xff]   ;;  %v1008_v27 = vld [vmem:[#allocation5] sm:$0xff]   ;;  %v84_v54 = vsub.s32 0, %v83_v53  ;;  %v88_v56 = vsub.s32 1, %v83_v53 }
  0x2f   :  { %v1022_v26 = vld [vmem:[%s1360_s3 + $0x18] sm:$0xff]   ;;  %v66_v28 = vpack.c.bf16 %v65_v22, %v65_v22  ;;  %v1011_v29 = vld [vmem:[#allocation5 + $0x48] sm:$0xff]   ;;  %v1025_v30 = vld [vmem:[%s1360_s3 + $0x60] sm:$0xff]  }
  0x30   :  { %v163_v25 = vsel %vm161_vm0, %v820_v20, 0  ;;  %v1026_v31 = vld [vmem:[%s1360_s3 + $0x20] sm:$0xff]   ;;  %v1012_v32 = vld [vmem:[#allocation5 + $0x8] sm:$0xff]   ;;  %v1015_v33 = vld [vmem:[#allocation5 + $0x50] sm:$0xff]  }
  0x31   :  { %173 = vmatpush1.bf16.msra.mxu0 %v995_v6  ;;  %878 = vmatpush3.bf16.msra.mxu1 %v1014_v15  ;;  %v1029_v34 = vld [vmem:[%s1360_s3 + $0x68] sm:$0xff]   ;;  %v1016_v35 = vld [vmem:[#allocation5 + $0x10] sm:$0xff]   ;;  %v1019_v36 = vld [vmem:[#allocation5 + $0x58] sm:$0xff]  }
  0x32   :  { %174 = vmatprep.subr.bf16.mxu0 %v996_v7  ;;  %879 = vmatprep.subr.bf16.mxu1 %v1017_v18  ;;  %v1020_v37 = vld [vmem:[#allocation5 + $0x18] sm:$0xff]   ;;  %v1023_v38 = vld [vmem:[#allocation5 + $0x60] sm:$0xff]   ;;  %v1027_v40 = vld [vmem:[#allocation5 + $0x68] sm:$0xff]  }
  0x33   :  { %v1024_v39 = vld [vmem:[#allocation5 + $0x20] sm:$0xff]   ;;  %v1028_v41 = vld [vmem:[#allocation5 + $0x28] sm:$0xff]   ;;  %v1031_v43 = vld [vmem:[#allocation5 + $0x70] sm:$0xff]  }
  0x34   :  { %v1030_v42 = vld [vmem:[%s1360_s3 + $0x28] sm:$0xff]   ;;  %v1032_v44 = vld [vmem:[#allocation5 + $0x30] sm:$0xff]   ;;  %v1033_v45 = vld [vmem:[%s1360_s3 + $0x70] sm:$0xff]  }
  0x35   :  { %175 = vmatpush1.bf16.msra.mxu0 %v998_v8  ;;  %880 = vmatpush3.bf16.msra.mxu1 %v1018_v21  ;;  %v1034_v46 = vld [vmem:[%s1360_s3 + $0x30] sm:$0xff]   ;;  %v1035_v47 = vld [vmem:[#allocation5 + $0x78] sm:$0xff]   ;;  %v1037_v49 = vld [vmem:[%s1360_s3 + $0x78] sm:$0xff]  }
  0x36   :  { %176 = vmatprep.subr.bf16.mxu0 %v999_v9  ;;  %881 = vmatprep.subr.bf16.mxu1 %v1021_v24  ;;  %v1036_v48 = vld [vmem:[#allocation5 + $0x38] sm:$0xff]   ;;  %v1038_v50 = vld [vmem:[%s1360_s3 + $0x38] sm:$0xff]   ;;  %v1040_v14 = vld [vmem:[%s1365_s8 + $0x8] sm:$0xff]  }
  0x37   :  { %v80_v55 = vld [vmem:[%s1359_s2] sm:$0x3]  ;;  %v1045_v15 = vld [vmem:[%s1362_s5 + $0x10] sm:$0xff]   ;;  %v1044_v18 = vld [vmem:[%s1365_s8 + $0x18] sm:$0xff]  }
  0x38   :  { %v85_v57 = vrot.slane %v80_v55, %v84_v54  ;;  %v89_v58 = vrot.slane %v80_v55, %v88_v56  ;;  %v1041_v8 = vld [vmem:[%s1362_s5] sm:$0xff]   ;;  %v1042_v16 = vld [vmem:[%s1365_s8 + $0x10] sm:$0xff]   ;;  %v1048_v21 = vld [vmem:[%s1365_s8 + $0x28] sm:$0xff]  }
  0x39   :  { %177 = vmatpush1.bf16.msra.mxu0 %v1001_v12  ;;  %882 = vmatpush3.bf16.msra.mxu1 %v1022_v26  ;;  %v1039_v11 = vld [vmem:[%s1365_s8] sm:$0xff]   ;;  %v1050_v22 = vld [vmem:[%s1365_s8 + $0x30] sm:$0xff]   ;;  %v1052_v24 = vld [vmem:[%s1365_s8 + $0x38] sm:$0xff]  }
  0x3a   :  { %178 = vmatprep.subr.bf16.mxu0 %v1002_v13  ;;  %883 = vmatprep.subr.bf16.mxu1 %v1025_v30  ;;  %v1043_v13 = vld [vmem:[%s1362_s5 + $0x8] sm:$0xff]   ;;  %v1046_v20 = vld [vmem:[%s1365_s8 + $0x20] sm:$0xff]   ;;  %v1054_v26 = vld [vmem:[%s1362_s5 + $0x38] sm:$0xff]  }
  0x3d   :  { %179 = vmatpush1.bf16.msra.mxu0 %v1004_v17  ;;  %884 = vmatpush3.bf16.msra.mxu1 %v1026_v31  ;;  %v1047_v17 = vld [vmem:[%s1362_s5 + $0x18] sm:$0xff]  }
  0x3e   :  { %822 = vmatprep.subr.msk.bf16.mxu0 %vm161_vm0, %v821_v19  ;;  %885 = vmatprep.subr.bf16.mxu1 %v1029_v34  ;;  %v1049_v19 = vld [vmem:[%s1362_s5 + $0x20] sm:$0xff]  }
  0x41   :  { %181 = vmatpush1.bf16.msra.mxu0 %v163_v25  ;;  %886 = vmatpush3.bf16.msra.mxu1 %v1030_v42  ;;  %v1053_v25 = vld [vmem:[%s1362_s5 + $0x30] sm:$0xff]  }
  0x42   :  { %897 = vmatprep.subr.bf16.mxu0 %v1007_v23  ;;  %887 = vmatprep.subr.bf16.mxu1 %v1033_v45  ;;  %v1051_v23 = vld [vmem:[%s1362_s5 + $0x28] sm:$0xff]  }
  0x44   :  { %823 = vmatmul.mubr.msk.bf16.vlgmr.msra.gmra.mrb[0].mxu0 %vm157_vm1, %v66_v28  ;;  %v841_v28 = vld [vmem:[%s1364_s7] ss:$0 sm:$0xff]  ;;  %s1136_s7 = smov [#allocation7]  }
  0x45   :  { %898 = vmatpush3.bf16.msra.mxu0 %v1008_v27  ;;  %888 = vmatpush3.bf16.msra.mxu1 %v1034_v46  ;;  %s798_s18 = sshll.u32 %s1136_s7, 4  ;;  %s799_s18 = int_to_ptr.vmem [resolvable:$true] %s798_s18 }
  0x46   :  { %899 = vmatprep.subr.bf16.mxu0 %v1011_v29  ;;  %889 = vmatprep.subr.bf16.mxu1 %v1037_v49  ;;  %s1099_s19 = scalar_lea.vmem %s799_s18, 128  ;;  %p1104_p3 = scmp.lt.s32.totalorder %s799_s18, %s799_s18 }
  0x47   :  { %p1100_p2 = scmp.ne.s32.totalorder %s799_s18, %s1099_s19  ;;  %p1105_p4 = scmp.lt.s32.totalorder %s1099_s19, %s1099_s19 }
  0x49   :  { %900 = vmatpush3.bf16.msra.mxu0 %v1012_v32  ;;  %890 = vmatpush3.bf16.msra.mxu1 %v1038_v50  ;;  %p1106_p5 = por %p1105_p4, %p1104_p3 }
  0x4a   :  { %901 = vmatprep.subr.bf16.mxu0 %v1015_v33  ;;  %937 = vmatprep.subr.bf16.mxu1 %v1134_v51  ;;  %v824_v33 = vld [vmem:[%s1361_s4] ss:$0 sm:$0xff] }
  0x4b   :  { %p1107_p6 = pnand %p1106_p5, %p1100_p2 }
  0x4d   :  { %902 = vmatpush3.bf16.msra.mxu0 %v1016_v35 }
  0x4e   :  { %903 = vmatprep.subr.bf16.mxu0 %v1019_v36 }
  0x51   :  { %904 = vmatpush3.bf16.msra.mxu0 %v1020_v37 }
  0x52   :  { %905 = vmatprep.subr.bf16.mxu0 %v1023_v38 }
  0x55   :  { %906 = vmatpush3.bf16.msra.mxu0 %v1024_v39 }
  0x56   :  { %907 = vmatprep.subr.bf16.mxu0 %v1027_v40 }
  0x59   :  { %908 = vmatpush3.bf16.msra.mxu0 %v1028_v41 }
  0x5a   :  { %909 = vmatprep.subr.bf16.mxu0 %v1031_v43 }
  0x5d   :  { %910 = vmatpush3.bf16.msra.mxu0 %v1032_v44 }
  0x5e   :  { %911 = vmatprep.subr.bf16.mxu0 %v1035_v47 }
  0x61   :  { %912 = vmatpush3.bf16.msra.mxu0 %v1036_v48 }
  0x62   :  { %957 = vmatprep.subr.bf16.mxu0 %v1134_v51 }
 0x117   :  { %v202_v59 = vpop.f32.mrb[0].mxu0 }
 0x118   :  { %v203_v60 = vadd.f32 %v202_v59, %v85_v57  ;;  %v204_v61 = vpop.f32.mrb[1].mxu0 }
 0x119   :  { %v205_v62 = vadd.f32 %v204_v61, %v89_v58  ;;  %v206_v63 = vpop.f32.mrb[2].mxu0 }
 0x11a   :  { %v209_v0 = vmul.f32 0.01, %v203_v60  ;;  %v409_v1 = vmax.f32 %v203_v60, 0.0  ;;  %v207_v2 = vpop.f32.mrb[3].mxu0 }
 0x11b   :  { %v410_v3 = vmax.f32 %v205_v62, 0.0  ;;  %v210_v4 = vmul.f32 0.01, %v205_v62 }
 0x11c   :  { %v211_v5 = vmax.f32 %v203_v60, %v209_v0  ;;  %v411_v9 = vpack.c.bf16 %v409_v1, %v409_v1 }
 0x11d   :  { %v412_v6 = vpack.c.bf16 %v410_v3, %v410_v3  ;;  %v212_v7 = vmax.f32 %v205_v62, %v210_v4 }
 0x11e   :  { %v213_v12 = vpack.c.bf16 %v211_v5, %v211_v5 }
 0x11f   :  { %580 = vmatprep.mubr.bf16.mxu0 %v412_v6  ;;  %v214_v10 = vpack.c.bf16 %v212_v7, %v212_v7 }
 0x120   :  { %581 = vmatmul.mubr.bf16.vlgmr.msra.gmra.mrb[4].mxu0 %v411_v9 }
 0x121   :  { %382 = vmatprep.mubr.bf16.mxu1 %v214_v10  ;;  %958 = vmatpush3.bf16.msra.mxu0 %v1041_v8 }
 0x122   :  { %383 = vmatmul.mubr.bf16.vlgmr.msra.gmra.mrb[0].mxu1 %v213_v12  ;;  %959 = vmatprep.subr.bf16.mxu0 %v1134_v51 }
 0x123   :  { %938 = vmatpush3.bf16.msra.mxu1 %v1039_v11  ;;  %953 = vmatprep.mubr.msk.bf16.mxu1 %vm1135_vm2, %v1134_v51 }
 0x124   :  { %939 = vmatprep.subr.bf16.mxu1 %v1134_v51  ;;  %973 = vmatprep.mubr.msk.bf16.mxu0 %vm1135_vm2, %v1134_v51 }
 0x125   :  { %960 = vmatpush3.bf16.msra.mxu0 %v1043_v13 }
 0x126   :  { %961 = vmatprep.subr.bf16.mxu0 %v1134_v51 }
 0x127   :  { %940 = vmatpush3.bf16.msra.mxu1 %v1040_v14 }
 0x128   :  { %941 = vmatprep.subr.bf16.mxu1 %v1134_v51 }
 0x129   :  { %962 = vmatpush3.bf16.msra.mxu0 %v1045_v15 }
 0x12a   :  { %963 = vmatprep.subr.bf16.mxu0 %v1134_v51 }
 0x12b   :  { %942 = vmatpush3.bf16.msra.mxu1 %v1042_v16 }
 0x12c   :  { %943 = vmatprep.subr.bf16.mxu1 %v1134_v51 }
 0x12d   :  { %964 = vmatpush3.bf16.msra.mxu0 %v1047_v17 }
 0x12e   :  { %965 = vmatprep.subr.bf16.mxu0 %v1134_v51 }
 0x12f   :  { %944 = vmatpush3.bf16.msra.mxu1 %v1044_v18 }
 0x130   :  { %945 = vmatprep.subr.bf16.mxu1 %v1134_v51 }
 0x131   :  { %966 = vmatpush3.bf16.msra.mxu0 %v1049_v19 }
 0x132   :  { %967 = vmatprep.subr.bf16.mxu0 %v1134_v51 }
 0x133   :  { %946 = vmatpush3.bf16.msra.mxu1 %v1046_v20 }
 0x134   :  { %947 = vmatprep.subr.bf16.mxu1 %v1134_v51 }
 0x135   :  { %968 = vmatpush3.bf16.msra.mxu0 %v1051_v23 }
 0x136   :  { %969 = vmatprep.subr.bf16.mxu0 %v1134_v51 }
 0x137   :  { %948 = vmatpush3.bf16.msra.mxu1 %v1048_v21 }
 0x138   :  { %949 = vmatprep.subr.bf16.mxu1 %v1134_v51 }
 0x139   :  { %970 = vmatpush3.bf16.msra.mxu0 %v1053_v25 }
 0x13a   :  { %971 = vmatprep.subr.bf16.mxu0 %v1134_v51 }
 0x13b   :  { %950 = vmatpush3.bf16.msra.mxu1 %v1050_v22 }
 0x13c   :  { %951 = vmatprep.subr.bf16.mxu1 %v1134_v51  ;;  %v874_v51 = vld [vmem:[%s1366_s9] ss:$0 sm:$0xff] }
 0x13d   :  { %972 = vmatpush3.bf16.msra.mxu0 %v1054_v26 }
 0x13f   :  { %952 = vmatpush3.bf16.msra.mxu1 %v1052_v24 }
 0x1f3   :  { %v913_v27 = vpop.f32.mrb[4].mxu0 }
 0x1f4   :  { %v914_v29 = vpop.f32.mrb[5].mxu0 }
 0x1f5   :  { %v915_v30 = vadd.f32 %v914_v29, %v913_v27  ;;  %v891_v31 = vpop.f32.mrb[0].mxu1  ;;  %v916_v32 = vpop.f32.mrb[6].mxu0 }
 0x1f6   :  { %v892_v34 = vpop.f32.mrb[1].mxu1  ;;  %v917_v35 = vpop.f32.mrb[7].mxu0 }
 0x1f7   :  { %v583_v36 = vadd.f32 %v915_v30, %v841_v28  ;;  %v893_v37 = vadd.f32 %v892_v34, %v891_v31  ;;  %v894_v38 = vpop.f32.mrb[2].mxu1 }
 0x1f8   :  { %v895_v39 = vpop.f32.mrb[3].mxu1 }
 0x1f9   :  { %v588_v40 = vmax.f32 %v583_v36, 0.0  ;;  %v385_v41 = vadd.f32 %v893_v37, %v824_v33 }
 0x1fb   :  { %v589_v42 = vpack.c.bf16 %v588_v40, %v588_v40  ;;  %v390_v43 = vmul.f32 0.01, %v385_v41 }
 0x1fd   :  { %v391_v44 = vmax.f32 %v385_v41, %v390_v43  ;;  %954 = vmatmul.mubr.bf16.vlgmr.msra.gmra.mrb[4].mxu1 %v589_v42 }
 0x1ff   :  { %v392_v45 = vpack.c.bf16 %v391_v44, %v391_v44 }
 0x201   :  { %974 = vmatmul.mubr.bf16.vlgmr.msra.gmra.mrb[8].mxu0 %v392_v45 }
 0x2d0   :  { %v688_v46 = vpop.f32.mrb[4].mxu1 }
 0x2d1   :  { %v955_v47 = vpop.f32.mrb[5].mxu1 }
 0x2d2   :  { %v691_v48 = vpop.f32.mrb[6].mxu1 }
 0x2d3   :  { %v956_v49 = vpop.f32.mrb[7].mxu1 }
 0x2d4   :  { %v776_v50 = vpop.f32.mrb[8].mxu0 }
 0x2d5   :  { %v777_v52 = vadd.f32 %v776_v50, %v688_v46  ;;  %v975_v53 = vpop.f32.mrb[9].mxu0 }
 0x2d6   :  { %v779_v54 = vpop.f32.mrb[10].mxu0 }
 0x2d7   :  { %v789_v55 = vadd.f32 %v874_v51, %v777_v52  ;;  %v976_v56 = vpop.f32.mrb[11].mxu0 }
 0x2d9   :  { %791 = vst.msk [vmem:[#allocation7] sm:$0xff] %vm790_vm3, %v789_v55 }
 0x2da   :  { %1110 = shalt.err (!%p1107_p6)
}
 0x2db   :  { %s1111_s9 = scalar_lea.hbm %s1367_s10, 128 }
 0x2dc   :  { %p1112_p7 = scmp.ne.s32.totalorder %s1367_s10, %s1111_s9  ;;  %p1115_p8 = scmp.lt.u32.totalorder %s1111_s9, %s1367_s10 }
 0x2de   :  { %p1117_p9 = pnand %p1115_p8, %p1112_p7 }
 0x2e0   :  { %1120 = shalt.err (!%p1117_p9)
}
 0x2e1   :  { %801 = dma.vmem_to_hbm [thread:$0]  %s799_s18, 128, %s1367_s10, [#allocation4]  }
 0x2e2   :  { %1125 = dma.done.wait [#allocation4], 128  }
 0x2e3   :  { %1126 = vsyncadd [#allocation4], 4294967168 }
 0x2e4   :  { %805 = vsyncpa [#allocation3], 1 }
 0x2e5   :  { %806 = vsyncpa [#allocation6], 1 }
 0x2e6   :  { %807 = vsyncpa [#allocation4], 1 }

</bundles_post_ra>
